<compile_context>
chip_gen: v5e
topology: v5e:2x2
jax: 0.10.0
libtpu: 0.0.40
codegen_flags: <defaults>
</compile_context>

<pallas_src>
import jax
import jax.numpy as jnp
from jax.experimental import pallas as pl
from jax.experimental.pallas import tpu as pltpu


def _round_up(v, m):
    return (v + m - 1) // m * m


# ---------------------------------------------------------------------------
# Fused per-scale kernel: (base 1x1 conv  o  all heads of that scale), folded.
# Channels-major orientation:  o = W_fused^T @ x  (+ bias broadcast on lanes).
# ---------------------------------------------------------------------------
def _fused_scale_kernel(wt_ref, b_ref, x_ref, o_ref):
    # wt_ref: (Cop, Cin)   bf16   -- folded (W_base @ W_heads)^T
    # b_ref:  (Cop, 1)     f32    -- folded bias, broadcasts along pixel lanes
    # x_ref:  (1, Cin, TM) f32    -- one image's pixel tile, channels on sublanes
    # o_ref:  (1, Cop, TM) f32
    x = x_ref[0].astype(wt_ref.dtype)                       # (Cin, TM) bf16
    y = jnp.dot(wt_ref[...], x, preferred_element_type=jnp.float32)
    o_ref[0] = y + b_ref[...]


def _fused_scale_call(x3d, wt, b, *, tm_cap=4096):
    """x3d: (N, Cin, M) f32; wt: (Cop, Cin) bf16; b: (Cop, 1) f32
    -> (N, Cop, M) f32."""
    N, Cin, M = x3d.shape
    Cop = wt.shape[0]

    # Pixel tile: either the full extent (legal block dim) or a multiple of
    # 128 lanes, padding M up to a tile multiple.  Big tiles amortize the
    # ~0.35 us per-step pipeline overhead; working set stays tiny
    # (<1 MiB double-buffered) on every generation's scoped-VMEM default.
    if M <= tm_cap:
        tm_eff, Mp = M, M
    else:
        tm_eff = max(128, (tm_cap // 128) * 128)
        Mp = _round_up(M, tm_eff)
        if Mp != M:
            x3d = jnp.pad(x3d, ((0, 0), (0, 0), (0, Mp - M)))

    grid = (N, Mp // tm_eff)

    flops = 2 * N * Mp * Cin * Cop
    bytes_accessed = (N * Mp * Cin * 4          # x tiles (f32 in HBM)
                      + N * Mp * Cop * 4        # output (f32)
                      + Cop * Cin * 2 + Cop * 4)  # weights + bias

    out = pl.pallas_call(
        _fused_scale_kernel,
        out_shape=jax.ShapeDtypeStruct((N, Cop, Mp), jnp.float32),
        grid=grid,
        in_specs=[
            pl.BlockSpec((Cop, Cin), lambda n, p: (0, 0)),
            pl.BlockSpec((Cop, 1), lambda n, p: (0, 0)),
            pl.BlockSpec((1, Cin, tm_eff), lambda n, p: (n, 0, p)),
        ],
        out_specs=pl.BlockSpec((1, Cop, tm_eff), lambda n, p: (n, 0, p)),
        compiler_params=pltpu.CompilerParams(
            dimension_semantics=("parallel", "parallel")),
        cost_estimate=pl.CostEstimate(
            flops=flops, transcendentals=0, bytes_accessed=bytes_accessed),
    )(wt, b, x3d)
    return out[:, :, :M]


# ---------------------------------------------------------------------------
# Synthetic ShellFork
# ---------------------------------------------------------------------------
class ShellForkPallas:
    """Mirrors ShellFork.forward: base_net -> (x1,x2,x3) -> flat list of heads."""

    def __init__(self, key, c_in=4, c_feat=32,
                 head_channels1=(8, 16), head_channels2=(8, 16),
                 head_channels3=(8,)):
        keys = jax.random.split(key, 16)
        ki = iter(range(16))

        def init_w(k, cin, cout):
            return jax.random.normal(k, (cin, cout), jnp.float32) * 0.1

        def init_b(k, cout):
            return jax.random.normal(k, (cout,), jnp.float32) * 0.01

        # base_net: three 1x1 convs at io scales 1, 2, 4 (f32 masters kept
        # for the pure-JAX reference check)
        self.base_w = [init_w(keys[next(ki)], c_in, c_feat) for _ in range(3)]
        self.base_b = [init_b(keys[next(ki)], c_feat) for _ in range(3)]
        self.base_strides = (1, 2, 4)
        self.input_output_scale = (1, 2, 4)

        def make_heads(chs):
            ws, bs = [], []
            for c in chs:
                ws.append(init_w(keys[next(ki)], c_feat, c))
                bs.append(init_b(keys[next(ki)], c))
            return ws, bs

        self.h1_w, self.h1_b = make_heads(head_channels1)
        self.h2_w, self.h2_b = make_heads(head_channels2)
        self.h3_w, self.h3_b = make_heads(head_channels3)

        # --- folded, kernel-side parameters (per scale) -------------------
        # base and heads are both 1x1 (linear), so fold:
        #   W_fused = W_base @ [W_h0 | W_h1 | ...]   (Cin, Csum)
        #   b_fused = b_base @ W_heads + b_heads     (Csum,)
        # pad Csum only to a multiple of 8 (sublane), store transposed
        # (channels-major) for the y^T = W^T x^T kernel.
        self.wt_fused, self.b_fused, self.head_splits = [], [], []
        heads = [(self.h1_w, self.h1_b), (self.h2_w, self.h2_b),
                 (self.h3_w, self.h3_b)]
        for s in range(3):
            hw, hb = heads[s]
            w_cat = jnp.concatenate(hw, axis=1)              # (Cf, Csum)
            b_cat = jnp.concatenate(hb, axis=0)              # (Csum,)
            w_f = self.base_w[s] @ w_cat                     # (Cin, Csum) f32
            b_f = self.base_b[s] @ w_cat + b_cat             # (Csum,)    f32
            csum = int(w_cat.shape[1])
            cop = _round_up(csum, 8)
            w_f = jnp.pad(w_f, ((0, 0), (0, cop - csum)))
            b_f = jnp.pad(b_f, ((0, cop - csum),))
            self.wt_fused.append(jnp.transpose(w_f).astype(jnp.bfloat16))
            self.b_fused.append(b_f.reshape(cop, 1).astype(jnp.float32))
            self.head_splits.append([int(w.shape[1]) for w in hw])

    def io_scales(self):
        return ([self.input_output_scale[0] for _ in self.h1_w]
                + [self.input_output_scale[1] for _ in self.h2_w]
                + [self.input_output_scale[2] for _ in self.h3_w])

    def __call__(self, x):
        # x: NCHW f32 -- already channels-major; no layout transposes needed.
        N, Cin, H, W = x.shape
        outs = []
        for s_idx, stride in enumerate(self.base_strides):
            xs = x if stride == 1 else x[:, :, ::stride, ::stride]
            h, w = xs.shape[2], xs.shape[3]
            x3d = xs.reshape(N, Cin, h * w)                  # free reshape

            # fused: base conv of this scale + all heads of this scale
            y3d = _fused_scale_call(x3d, self.wt_fused[s_idx],
                                    self.b_fused[s_idx])     # (N, Cop, h*w)

            # per-head outputs = contiguous channel slices + free reshapes
            off = 0
            for ch in self.head_splits[s_idx]:
                outs.append(y3d[:, off:off + ch, :].reshape(N, ch, h, w))
                off += ch
        return outs   # flat list, same ordering as ShellFork.forward


# ---------------------------------------------------------------------------
# Reference (pure jnp, f32) for a sanity check
# ---------------------------------------------------------------------------
def _ref_conv1x1(x_nchw, w, b, stride=1):
    if stride != 1:
        x_nchw = x_nchw[:, :, ::stride, ::stride]
    y = jnp.einsum('nchw,cd->ndhw', x_nchw, w) + b[None, :, None, None]
    return y


if __name__ == "__main__":
    key = jax.random.PRNGKey(0)
    k_param, k_x = jax.random.split(key)

    # input: NCHW, small shapes
    x = jax.random.normal(k_x, (2, 4, 16, 16), jnp.float32)

    model = ShellForkPallas(k_param)
    outs = model(x)
    outs = [jax.block_until_ready(o) for o in outs]

    # sanity-check against pure-JAX f32 reference (kernel uses bf16 folded
    # weights + bf16 activations with f32 accumulation)
    x1 = _ref_conv1x1(x, model.base_w[0], model.base_b[0], 1)
    x2 = _ref_conv1x1(x, model.base_w[1], model.base_b[1], 2)
    x3 = _ref_conv1x1(x, model.base_w[2], model.base_b[2], 4)
    ref = ([_ref_conv1x1(x1, w, b) for w, b in zip(model.h1_w, model.h1_b)]
           + [_ref_conv1x1(x2, w, b) for w, b in zip(model.h2_w, model.h2_b)]
           + [_ref_conv1x1(x3, w, b) for w, b in zip(model.h3_w, model.h3_b)])

    assert len(outs) == len(ref) == 5
    for o, r in zip(outs, ref):
        assert o.shape == r.shape, (o.shape, r.shape)
        assert jnp.allclose(o, r, atol=2e-2, rtol=2e-2), \
            float(jnp.max(jnp.abs(o - r)))

    # io_scales mirrors ShellFork.io_scales()
    assert model.io_scales() == [1, 1, 2, 2, 4]

    print("KERNEL_OK")
</pallas_src>

<mosaic_0001>
module attributes {stable_mosaic.version = 11 : i64} {
  func.func @_fused_scale_kernel(%arg0: i32, %arg1: i32, %arg2: memref<24x4xbf16, #tpu.memory_space<vmem>>, %arg3: memref<24x1xf32, #tpu.memory_space<vmem>>, %arg4: memref<1x4x256xf32, #tpu.memory_space<vmem>>, %arg5: memref<1x24x256xf32, #tpu.memory_space<vmem>>) attributes {dimension_semantics = [#tpu.dimension_semantics<parallel>, #tpu.dimension_semantics<parallel>], iteration_bounds = array<i64: 2, 1>, scalar_prefetch = 0 : i64, scratch_operands = 0 : i64, tpu.core_type = #tpu.core_type<tc>, window_params = [{pipeline_mode = #tpu.pipeline_mode<synchronous>, transform_indices = @transform_0, window_bounds = array<i64: 24, 4>}, {pipeline_mode = #tpu.pipeline_mode<synchronous>, transform_indices = @transform_1, window_bounds = array<i64: 24, 1>}, {transform_indices = @transform_2, window_bounds = array<i64: 1, 4, 256>}, {transform_indices = @transform_3, window_bounds = array<i64: 1, 24, 256>}]} {
    %c0 = arith.constant 0 : index
    %c0_0 = arith.constant 0 : index
    %c0_1 = arith.constant 0 : index
    %0 = vector.load %arg4[%c0, %c0_0, %c0_1] : memref<1x4x256xf32, #tpu.memory_space<vmem>>, vector<1x4x256xf32>
    %1 = vector.shape_cast %0 : vector<1x4x256xf32> to vector<4x256xf32>
    %2 = arith.truncf %1 : vector<4x256xf32> to vector<4x256xbf16>
    %c0_2 = arith.constant 0 : index
    %c0_3 = arith.constant 0 : index
    %3 = vector.load %arg2[%c0_2, %c0_3] : memref<24x4xbf16, #tpu.memory_space<vmem>>, vector<24x4xbf16>
    %cst = arith.constant dense<0.000000e+00> : vector<24x256xf32>
    %4 = tpu.matmul %3, %2, %cst {dimension_numbers = #tpu.dot_dimension_numbers<[1], [0], [0], [1], [0, 0, 1, 1], [], []>} : vector<24x4xbf16>, vector<4x256xbf16>, vector<24x256xf32> -> vector<24x256xf32>
    %c0_4 = arith.constant 0 : index
    %c0_5 = arith.constant 0 : index
    %5 = vector.load %arg3[%c0_4, %c0_5] : memref<24x1xf32, #tpu.memory_space<vmem>>, vector<24x1xf32>
    %6 = vector.broadcast %5 : vector<24x1xf32> to vector<24x256xf32>
    %7 = arith.addf %4, %6 : vector<24x256xf32>
    %c0_6 = arith.constant 0 : index
    %c0_7 = arith.constant 0 : index
    %c0_8 = arith.constant 0 : index
    %8 = vector.load %arg5[%c0_6, %c0_7, %c0_8] : memref<1x24x256xf32, #tpu.memory_space<vmem>>, vector<1x24x256xf32>
    %9 = vector.shape_cast %8 : vector<1x24x256xf32> to vector<24x256xf32>
    %10 = vector.shape_cast %7 : vector<24x256xf32> to vector<1x24x256xf32>
    tpu.vector_store %arg5[%c0_6, %c0_7, %c0_8], %10 {strides = array<i32>} : memref<1x24x256xf32, #tpu.memory_space<vmem>>, vector<1x24x256xf32>,
    return
  }
  func.func @transform_0(%arg0: i32, %arg1: i32) -> (i32, i32) {
    %c0_i32 = arith.constant 0 : i32
    %c0_i32_0 = arith.constant 0 : i32
    %c0_i32_1 = arith.constant 0 : i32
    return %c0_i32, %c0_i32_0 : i32, i32
  }
  func.func @transform_1(%arg0: i32, %arg1: i32) -> (i32, i32) {
    %c0_i32 = arith.constant 0 : i32
    %c0_i32_0 = arith.constant 0 : i32
    %c0_i32_1 = arith.constant 0 : i32
    return %c0_i32, %c0_i32_0 : i32, i32
  }
  func.func @transform_2(%arg0: i32, %arg1: i32) -> (i32, i32, i32) {
    %c0_i32 = arith.constant 0 : i32
    %c0_i32_0 = arith.constant 0 : i32
    return %arg0, %c0_i32, %arg1 : i32, i32, i32
  }
  func.func @transform_3(%arg0: i32, %arg1: i32) -> (i32, i32, i32) {
    %c0_i32 = arith.constant 0 : i32
    %c0_i32_0 = arith.constant 0 : i32
    return %arg0, %c0_i32, %arg1 : i32, i32, i32
  }
}

</mosaic_0001>

<bundles_post_ra>
// kernel: tpu_custom_call.1
= control target key start
LH: loop header
LB: loop body
LE: loop exit
PB: predicated region body
PF: predicated region fallthrough
CT: control target
= control target key end

     0   :  { %8 = vsyncpa [#allocation3], 0  ;;  %s695_s0 = inlined_call_operand.vmem [shape: bf16[24,4], index: 0, kind: input, shape index: {}]   ;;  %s696_s1 = inlined_call_operand.vmem [shape: f32[24,1], index: 1, kind: input, shape index: {}]   ;;  %s697_s2 = inlined_call_operand.vmem [shape: f32[2,4,256], index: 2, kind: input, shape index: {}]   ;;  %s698_s3 = inlined_call_operand.hbm [shape: f32[2,24,256], index: 3, kind: output, shape index: {}]  }
   0x1   :  { %10 = vsyncpa [#allocation3 + $0x1], 0  ;;  %s579_s12 = smov 0   ;;  %s581_s13 = smov 0  }
   0x2   :  { %s583_s14 = smov 0   ;;  %s585_s15 = smov 0  }
   0x3   :  { %s587_s16 = smov 0   ;;  %s589_s17 = smov 0  }
   0x4 LB: > { %s392_s18 = sadd.s32 4294967295, %s554_s17   ;;  %s393_s19 = sadd.s32 4294967294, %s554_s17   ;;  %s554_s17 = sphi %s589_s17, %s16_s17   ;;  %s550_s16 = sphi %s587_s16, %s705_s16   ;;  %s546_s15 = sphi %s585_s15, %s704_s15   ;;  %s542_s14 = sphi %s583_s14, %s703_s14   ;;  %s538_s13 = sphi %s581_s13, %s702_s13   ;;  %s534_s12 = sphi %s579_s12, %s701_s12  }
   0x5   : > { %s28_s20 = sadd.s32 1, %s550_s16  ;;  %s107_s21 = sadd.s32 1, %s542_s14 }
   0x6   : > { %p30_p0 = scmp.ge.s32.totalorder %s28_s20, 2  ;;  %p117_p1 = scmp.ne.s32.totalorder %s542_s14, %s538_s13 }
   0x7   : > { %p118_p2 = scmp.eq.s32.totalorder %s392_s18, 1  ;;  %p123_p3 = scmp.ne.s32.totalorder %s538_s13, %s534_s12 }
   0x8   : > { %s707_s20 = smov (%p30_p0, %s28_s20), 0  ;;  %p124_p5 = scmp.eq.s32.totalorder %s393_s19, 1 }
   0x9   : > { %p619_p4 = por %p118_p2, %p117_p1  ;;  %s102_s23 = ssub.s32 %s550_s16, %s707_s20 }
   0xa   : > { %p396_p6 = scmp.ge.s32.totalorder %s554_s17, 1  ;;  %p105_p7 = scmp.eq.s32.totalorder %s102_s23, 0 }
   0xb   : > { %p626_p8 = por %p124_p5, %p123_p3  ;;  %p161_p9 = scmp.lt.s32.totalorder %s554_s17, 3 }
   0xc   : > { %s632_s25 = scalar_select %p105_p7, %s542_s14, %s107_s21  }
   0xd   : > { %p162_p10 = pnand %p396_p6, %p161_p9 }
   0xe   : > { %p190_p11 = scmp.lt.s32.totalorder (!%p162_p10), %s546_s15, 1  ;;  %s186_s21 = sand.u32 (!%p162_p10), 1, %s538_s13  }
   0xf   : > { %165 = sbr.rel (%p162_p10) target bundleno = 180 (0xb4), region = 32  ;;  %s496_s10 = scalar_lea.hbm (!%p162_p10), %s698_s3, 96 }
  0x10   : > { %s414_s23 = smul.u32 (!%p162_p10), 48, %s186_s21 }
  0x11   : > { %s415_s26 = smul.u32 (!%p162_p10), 48, %s546_s15 }
  0x12   : > { %s188_s27 = scalar_lea.vmem (!%p162_p10), [#allocation2], %s414_s23 }
  0x14   : > { %v213_v0 = vld [vmem:[%s696_s1] sm:$0xff]  ;;  %v215_v1 = vld [vmem:[%s696_s1 + $0x10] sm:$0xff]  ;;  %s191_s30 = scalar_select %p190_p11, %s546_s15, 1  ;;  %v556_v2 = vmov 0   ;;  %v214_v4 = vld [vmem:[%s696_s1 + $0x8] sm:$0xff]  ;;  %vm246_vm0 = vcmask 1041408  }
  0x15   : > { %474 = vset.pattern.permute.xlu0 %v556_v2  ;;  %475 = vset.pattern.permute.xlu1 %v556_v2  ;;  %v212_v5 = vld [vmem:[%s695_s0 + $0x8] sm:$0xf]  ;;  %v411_v13 = vld [vmem:[%s695_s0] sm:$0xff]  ;;  %vm239_vm1 = vcmask 31744   ;;  %s296_s15 = scalar_lea.sflag [#allocation3], %s186_s21 }
  0x16   : > { %218 = vperm.xlu0 %474, %v213_v0   ;;  %228 = vperm.xlu1 %475, %v215_v1   ;;  %s410_s4 = sshll.u32 %s191_s30, 3  ;;  %v236_v6 = vunpack.c.l.b16 %v212_v5  ;;  %s309_s30 = scalar_lea.hbm %s698_s3, %s415_s26 }
  0x17   : > { %s197_s7 = scalar_lea.vmem %s697_s2, %s410_s4  ;;  %s310_s4 = sshll.u32 %s188_s27, 4  ;;  %s311_s4 = int_to_ptr.vmem [resolvable:$true] %s310_s4 }
  0x18   : > { %v201_v3 = vld [vmem:[%s197_s7] sm:$0xff]  ;;  %v238_v14 = vpack.c.b16 %v236_v6, %v236_v6  ;;  %s312_s5 = sshll.u32 %s309_s30, 4  ;;  %s313_s5 = int_to_ptr.hbm [resolvable:$true] %s312_s5 }
  0x19   : > { %203 = vst [vmem:[#allocation1] ss:$2 sm:$0xff] %v201_v3  ;;  %s490_s6 = sshra.s32 %s313_s5, 4  ;;  %s491_s6 = int_to_ptr.hbm [resolvable:$true] %s490_s6 }
  0x1a   : > { %s492_s7 = scalar_lea.hbm %s491_s6, 48  ;;  %p497_p1 = scmp.lt.s32.totalorder %s491_s6, %s698_s3 }
  0x1b   : > { %p493_p12 = scmp.ne.s32.totalorder %s491_s6, %s492_s7  ;;  %p498_p2 = scmp.lt.s32.totalorder %s496_s10, %s492_s7 }
  0x1d   : > { %p494_p13 = pnand %p493_p12, %p619_p4  ;;  %p499_p3 = por %p498_p2, %p497_p1 }
  0x1e   : > { %223 = vperm.xlu0 %474, %v214_v4  }
  0x1f   : > { %p495_p0 = pneg %p494_p13 }
  0x20   : > { %v204_v7 = vld.sshfl [vmem:[#allocation1] sm:$0xff pattern:$0x75316420]  ;;  %v205_v8 = vld.sshfl [vmem:[#allocation1 + $0x8] sm:$0xff pattern:$0x75316420] }
  0x21   : > { %v208_v9 = vpack.c.bf16 %v204_v7, %v204_v7  ;;  %v209_v10 = vpack.c.bf16 %v205_v8, %v205_v8  ;;  %p500_p5 = pnand %p499_p3, %p495_p0 }
  0x23   : > { %v248_v11 = vsel %vm246_vm0, %v208_v9, 0  ;;  %v251_v12 = vsel %vm246_vm0, %v209_v10, 0 }
  0x24   : > { %260 = vmatpush.bf16.msra.mxu0 %v248_v11  ;;  %412 = vmatpush.bf16.msra.mxu2 %v248_v11 }
  0x25   : > { %278 = vmatpush.bf16.msra.mxu1 %v251_v12  ;;  %413 = vmatpush.bf16.msra.mxu3 %v251_v12 }
  0x27   : > { %403 = vmatmul.msk.bf16.vlgmr.msra.gmra.mxu0 %vm239_vm1, %v411_v13  ;;  %404 = vmatmul.msk.bf16.vlgmr.msra.gmra.mxu2 %vm239_vm1, %v238_v14 }
  0x28   : > { %405 = vmatmul.msk.bf16.vlgmr.msra.gmra.mxu1 %vm239_vm1, %v411_v13  ;;  %406 = vmatmul.msk.bf16.vlgmr.msra.gmra.mxu3 %vm239_vm1, %v238_v14 }
  0x88   : > { %v219_v15 = vpop.permute.xlu0 %218  ;;  %v229_v20 = vpop.permute.xlu1 %228 }
  0x90   : > { %v224_v24 = vpop.permute.xlu0 %223 }
  0xa4   : > { %v262_v16 = vpop.f32.mrf.mxu0 }
  0xa5   : > { %v263_v17 = vadd.f32 %v262_v16, %v219_v15  ;;  %v280_v18 = vpop.f32.mrf.mxu1 }
  0xa6   : > { %v281_v19 = vadd.f32 %v280_v18, %v219_v15 }
  0xa7   : > { %289 = vst [vmem:[%s188_s27] sm:$0xff] %v263_v17 }
  0xa8   : > { %290 = vst [vmem:[%s188_s27 + $0x8] sm:$0xff] %v281_v19 }
  0xaa   : > { %v267_v21 = vpop.f32.mrf.mxu2 }
  0xab   : > { %v268_v22 = vadd.f32 %v267_v21, %v229_v20  ;;  %v285_v23 = vpop.f32.mrf.mxu3 }
  0xac   : > { %v286_v25 = vadd.f32 %v285_v23, %v229_v20  ;;  %v264_v26 = vpop.f32.mrf.mxu0 }
  0xad   : > { %293 = vst [vmem:[%s188_s27 + $0x20] sm:$0xff] %v268_v22  ;;  %v265_v27 = vadd.f32 %v264_v26, %v224_v24  ;;  %v282_v28 = vpop.f32.mrf.mxu1 }
  0xae   : > { %294 = vst [vmem:[%s188_s27 + $0x28] sm:$0xff] %v286_v25  ;;  %v283_v29 = vadd.f32 %v282_v28, %v224_v24 }
  0xaf   : > { %291 = vst [vmem:[%s188_s27 + $0x10] sm:$0xff] %v265_v27 }
  0xb0   : > { %292 = vst [vmem:[%s188_s27 + $0x18] sm:$0xff] %v283_v29 }
  0xb1   : > { %503 = shalt.err (!%p500_p5)
}
  0xb2   : > { %s557_s19 = smov 256   ;;  %s558_s21 = smov 16   ;;  %v269_v30 = vpop.f32.mrf.mxu2 }
  0xb3   : > { %416 = dma.vmem_to_hbm [thread:$0]  (%p619_p4), %s311_s4, 768, %s313_s5, %s296_s15, %s557_s19, %s557_s19, %s558_s21   ;;  %v287_v31 = vpop.f32.mrf.mxu3 }
  0xb4 PF: > { %p422_p6 = scmp.ge.s32.totalorder %s554_s17, 2  ;;  %s327_s23 = sand.u32 1, %s534_s12  }
  0xb5   : > { %s328_s26 = scalar_lea.sflag [#allocation3], %s327_s23 }
  0xb6   : > { %p419_p7 = pnand %p422_p6, %p626_p8 }
  0xb8   : > { %p420_p9 = pneg %p419_p7 }
  0xba   : > { %529 = dma.done.wait (%p420_p9), %s328_s26, 768  }
  0xbb   : > { %531 = vsyncadd (%p420_p9), %s328_s26, 4294966528  ;;  %s16_s17 = sadd.s32 1, %s554_s17   ;;  %s701_s12 = smov %s538_s13 }
  0xbc   : > { %p13_p10 = scmp.ge.s32.totalorder %s16_s17, 4   ;;  %s702_s13 = smov %s542_s14 }
  0xbd   : > { %s703_s14 = smov %s632_s25  ;;  %s704_s15 = smov %s550_s16 }
  0xbe   : > { %s705_s16 = smov %s707_s20  ;;  %15 = sbr.rel (!%p13_p10) target bundleno = 4 (0x4), region = 67 }
  0xc3   :  { %334 = vsyncpa [#allocation3], 1 }
  0xc4   :  { %336 = vsyncpa [#allocation3 + $0x1], 1 }

</bundles_post_ra>
